<compile_context>
chip_gen: v5e
topology: v5e:2x2
jax: 0.10.0
libtpu: 0.0.40
codegen_flags: <defaults>
</compile_context>

<pallas_src>
import jax
import jax.numpy as jnp
from jax import lax
from jax.experimental import pallas as pl
from jax.experimental.pallas import tpu as pltpu


def _round_up(n: int, m: int) -> int:
    return ((n + m - 1) // m) * m


def _tdnn_kernel_factory(Bt, L, E, F, NFp):
    T = L - F + 1  # number of valid conv output positions

    def kernel(x_ref, w_ref, o_ref):
        # x_ref: (Bt, L, E) VMEM   w_ref: (F*E, NFp) VMEM   o_ref: (Bt, NFp) VMEM
        x = x_ref[...]  # (Bt, L, E)

        # im2col: column k*E + e of the LHS holds x[b, t + k, e] -> (Bt, T, F*E).
        lhs = jnp.concatenate([x[:, k:k + T, :] for k in range(F)], axis=-1)

        # Single MXU matmul, K = F*E (contract lhs dim 2 with weight dim 0):
        #   (Bt, T, F*E) @ (F*E, NFp) -> (Bt, T, NFp), f32 accumulation.
        scores = lax.dot_general(
            lhs, w_ref[...],
            dimension_numbers=(((2,), (0,)), ((), ())),
            preferred_element_type=jnp.float32,
        )

        # ReLU fused into max-over-time: max_t relu(s_t) == relu(max_t s_t).
        pooled = jnp.maximum(jnp.max(scores, axis=1), 0.0)  # (Bt, NFp)
        o_ref[...] = pooled.astype(o_ref.dtype)

    return kernel


def tdnn_forward(x, weight, filter_size, *, batch_tile=8):
    """x: (B, L, E) float32; weight: (NF, 1, E, F) as in nn.Conv2d.

    Returns (B, 1, NF, 1), matching the PyTorch module exactly.
    """
    B, L, E = x.shape
    NF = weight.shape[0]
    F = filter_size
    assert weight.shape == (NF, 1, E, F)
    assert batch_tile % 8 == 0, "batch_tile must be a multiple of 8 (sublanes)"

    T = L - F + 1

    # Lane-dense output: pad NF up to a multiple of 128. Padded filter columns
    # are zero -> their conv output is 0, relu(0)=0, maxpool over zeros = 0,
    # so slicing back to NF in the wrapper is exact.
    NFp = _round_up(NF, 128)
    # (NF, 1, E, F) -> (F, E, NF) -> (F*E, NF): row k*E + e holds weight[n,0,e,k].
    w = jnp.transpose(weight[:, 0, :, :], (2, 1, 0)).reshape(F * E, NF)
    w = jnp.pad(w, ((0, 0), (0, NFp - NF)))

    # Sublane-dense batch tile: pad B up to a multiple of Bt (padded rows are
    # zeros; they are sliced away in the wrapper).
    Bt = batch_tile
    Bp = _round_up(B, Bt)
    xp = jnp.pad(x, ((0, Bp - B), (0, 0), (0, 0))) if Bp != B else x

    kernel = _tdnn_kernel_factory(Bt, L, E, F, NFp)

    cost = pl.CostEstimate(
        flops=2 * Bp * T * F * E * NFp,
        transcendentals=0,
        bytes_accessed=(Bp * L * E + F * E * NFp + Bp * NFp) * 4,
    )

    out = pl.pallas_call(
        kernel,
        out_shape=jax.ShapeDtypeStruct((Bp, NFp), x.dtype),
        grid_spec=pltpu.PrefetchScalarGridSpec(
            num_scalar_prefetch=0,
            grid=(Bp // Bt,),
            in_specs=[
                pl.BlockSpec((Bt, L, E), lambda b: (b, 0, 0)),
                pl.BlockSpec((F * E, NFp), lambda b: (0, 0)),  # resident weight
            ],
            out_specs=pl.BlockSpec((Bt, NFp), lambda b: (b, 0)),
        ),
        compiler_params=pltpu.CompilerParams(
            dimension_semantics=("parallel",)),
        cost_estimate=cost,
    )(xp, w)

    # (Bp, NFp) -> (B, NF) -> (B, 1, NF, 1), same as PyTorch's final permute.
    return out[:B, :NF][:, None, :, None]


def tdnn_reference(x, weight, filter_size):
    """Plain-JAX reference of the PyTorch forward (for verification)."""
    B, L, E = x.shape
    NF = weight.shape[0]
    F = filter_size
    T = L - F + 1
    w = jnp.transpose(weight[:, 0, :, :], (2, 1, 0))                   # (F, E, NF)
    windows = jnp.stack([x[:, k:k + T, :] for k in range(F)], axis=2)  # (B, T, F, E)
    score = jnp.einsum("btfe,fen->btn", windows, w)                    # (B, T, NF)
    score = jax.nn.relu(score)
    pooled = jnp.max(score, axis=1)                                    # (B, NF)
    return pooled[:, None, :, None]                                    # (B, 1, NF, 1)


if __name__ == "__main__":
    key = jax.random.PRNGKey(0)
    B, L, E = 2, 16, 32          # batch, seq_len, embed_size
    F, NF = 5, 64                # filter_size, num_filters

    kx, kw = jax.random.split(key)
    x = jax.random.normal(kx, (B, L, E), dtype=jnp.float32)
    # Deterministic "conv" weight, same shape as nn.Conv2d(1, NF, (E, F)).weight
    weight = jax.random.normal(kw, (NF, 1, E, F), dtype=jnp.float32) * 0.1

    out = jax.block_until_ready(tdnn_forward(x, weight, F))

    ref = tdnn_reference(x, weight, F)
    assert out.shape == (B, 1, NF, 1), out.shape
    assert jnp.allclose(out, ref, atol=1e-4, rtol=1e-4), "mismatch vs reference"

    print("KERNEL_OK")
</pallas_src>

<mosaic_0001>
module attributes {stable_mosaic.version = 11 : i64} {
  func.func @kernel(%arg0: i32, %arg1: memref<8x16x32xf32, #tpu.memory_space<vmem>>, %arg2: memref<160x128xf32, #tpu.memory_space<vmem>>, %arg3: memref<8x128xf32, #tpu.memory_space<vmem>>) attributes {dimension_semantics = [#tpu.dimension_semantics<parallel>], iteration_bounds = array<i64: 1>, scalar_prefetch = 0 : i64, scratch_operands = 0 : i64, tpu.core_type = #tpu.core_type<tc>, window_params = [{transform_indices = @transform_0, window_bounds = array<i64: 8, 16, 32>}, {pipeline_mode = #tpu.pipeline_mode<synchronous>, transform_indices = @transform_1, window_bounds = array<i64: 160, 128>}, {transform_indices = @transform_2, window_bounds = array<i64: 8, 128>}]} {
    %c0 = arith.constant 0 : index
    %c0_0 = arith.constant 0 : index
    %c0_1 = arith.constant 0 : index
    %0 = vector.load %arg1[%c0, %c0_0, %c0_1] : memref<8x16x32xf32, #tpu.memory_space<vmem>>, vector<8x16x32xf32>
    %1 = vector.extract_strided_slice %0 {offsets = [0, 0, 0], sizes = [8, 12, 32], strides = [1, 1, 1]} : vector<8x16x32xf32> to vector<8x12x32xf32>
    %2 = vector.extract_strided_slice %0 {offsets = [0, 1, 0], sizes = [8, 12, 32], strides = [1, 1, 1]} : vector<8x16x32xf32> to vector<8x12x32xf32>
    %3 = vector.extract_strided_slice %0 {offsets = [0, 2, 0], sizes = [8, 12, 32], strides = [1, 1, 1]} : vector<8x16x32xf32> to vector<8x12x32xf32>
    %4 = vector.extract_strided_slice %0 {offsets = [0, 3, 0], sizes = [8, 12, 32], strides = [1, 1, 1]} : vector<8x16x32xf32> to vector<8x12x32xf32>
    %5 = vector.extract_strided_slice %0 {offsets = [0, 4, 0], sizes = [8, 12, 32], strides = [1, 1, 1]} : vector<8x16x32xf32> to vector<8x12x32xf32>
    %6 = tpu.concatenate %1, %2, %3, %4, %5 in 2 : vector<8x12x32xf32>, vector<8x12x32xf32>, vector<8x12x32xf32>, vector<8x12x32xf32>, vector<8x12x32xf32> -> vector<8x12x160xf32>
    %c0_2 = arith.constant 0 : index
    %c0_3 = arith.constant 0 : index
    %7 = vector.load %arg2[%c0_2, %c0_3] : memref<160x128xf32, #tpu.memory_space<vmem>>, vector<160x128xf32>
    %cst = arith.constant dense<0.000000e+00> : vector<8x12x128xf32>
    %8 = tpu.matmul %6, %7, %cst {dimension_numbers = #tpu.dot_dimension_numbers<[2], [0], [0, 1], [1], [0, 0, 0, 1, 1, 1], [], []>} : vector<8x12x160xf32>, vector<160x128xf32>, vector<8x12x128xf32> -> vector<8x12x128xf32>
    %cst_4 = arith.constant dense<0xFF800000> : vector<8x128xf32>
    %9 = vector.multi_reduction <maximumf>, %8, %cst_4 [1] : vector<8x12x128xf32> to vector<8x128xf32>
    %cst_5 = arith.constant 0.000000e+00 : f32
    %10 = vector.broadcast %cst_5 : f32 to vector<8x128xf32>
    %11 = arith.maximumf %9, %10 : vector<8x128xf32>
    %c0_6 = arith.constant 0 : index
    %c0_7 = arith.constant 0 : index
    %12 = vector.load %arg3[%c0_6, %c0_7] : memref<8x128xf32, #tpu.memory_space<vmem>>, vector<8x128xf32>
    tpu.vector_store %arg3[%c0_6, %c0_7], %11 {strides = array<i32>} : memref<8x128xf32, #tpu.memory_space<vmem>>, vector<8x128xf32>,
    return
  }
  func.func @transform_0(%arg0: i32) -> (i32, i32, i32) {
    %c0_i32 = arith.constant 0 : i32
    %c0_i32_0 = arith.constant 0 : i32
    %c0_i32_1 = arith.constant 0 : i32
    return %arg0, %c0_i32, %c0_i32_0 : i32, i32, i32
  }
  func.func @transform_1(%arg0: i32) -> (i32, i32) {
    %c0_i32 = arith.constant 0 : i32
    %c0_i32_0 = arith.constant 0 : i32
    %c0_i32_1 = arith.constant 0 : i32
    return %c0_i32, %c0_i32_0 : i32, i32
  }
  func.func @transform_2(%arg0: i32) -> (i32, i32) {
    %c0_i32 = arith.constant 0 : i32
    %c0_i32_0 = arith.constant 0 : i32
    return %arg0, %c0_i32 : i32, i32
  }
}

</mosaic_0001>

<bundles_post_ra>
// kernel: tpu_custom_call.1
= control target key start
LH: loop header
LB: loop body
LE: loop exit
PB: predicated region body
PF: predicated region fallthrough
CT: control target
= control target key end

     0   :  { %7 = vsyncpa [#allocation3], 0  ;;  %s1381_s0 = inlined_call_operand.hbm [shape: f32[8,16,32], index: 0, kind: input, shape index: {}]   ;;  %s1382_s1 = inlined_call_operand.hbm [shape: f32[160,128], index: 1, kind: input, shape index: {}]   ;;  %s1383_s2 = inlined_call_operand.hbm [shape: f32[8,128], index: 2, kind: output, shape index: {}]  }
   0x1   :  { %8 = vsyncpa [#allocation6], 0 }
   0x2   :  { %9 = vsyncpa [#allocation4], 0  ;;  %s14_s11 = sshll.u32 %s1381_s0, 4  ;;  %s985_s12 = smov [#allocation2]   ;;  %s15_s11 = int_to_ptr.hbm [resolvable:$true] %s14_s11 }
   0x3   :  { %s16_s13 = sshll.u32 %s985_s12, 4  ;;  %s27_s16 = sshll.u32 %s1382_s1, 4  ;;  %s17_s13 = int_to_ptr.vmem [resolvable:$true] %s16_s13  ;;  %s28_s16 = int_to_ptr.hbm [resolvable:$true] %s27_s16 }
   0x4   :  { %s986_s17 = smov 128   ;;  %s987_s18 = smov 8  }
   0x5   :  { %22 = dma.hbm_to_vmem [thread:$0]  %s15_s11, 2048, %s17_s13, [#allocation3], %s986_s17, %s986_s17, %s987_s18  }
   0x6   :  { %s988_s19 = smov [#allocation5]  }
   0x7   :  { %s29_s20 = sshll.u32 %s988_s19, 4  ;;  %s30_s20 = int_to_ptr.vmem [resolvable:$true] %s29_s20 }
   0x8   :  { %35 = dma.hbm_to_vmem [thread:$0]  %s28_s16, 2560, %s30_s20, [#allocation6], %s986_s17, %s986_s17, %s987_s18  }
   0x9   :  { %979 = dma.done.wait [#allocation3], 2048  }
   0xa   :  { %980 = vsyncadd [#allocation3], 4294965248 }
   0xb   :  { %981 = dma.done.wait [#allocation6], 2560  }
   0xc   :  { %982 = vsyncadd [#allocation6], 4294964736  ;;  %v1014_v0 = vld [vmem:[#allocation2] sm:$0xff]  ;;  %v1016_v1 = vld [vmem:[#allocation2 + $0x8] sm:$0xff]  ;;  %vm222_vm0 = vcmask 1044480   ;;  %vm76_vm1 = vcmask 1046528  }
   0xd   :  { %v223_v2 = vrot.slane %v1014_v0, 3  ;;  %v224_v3 = vrot.slane %v1016_v1, 3  ;;  %v77_v4 = vrot.slane %v1014_v0, 1  ;;  %v78_v5 = vrot.slane %v1016_v1, 1  ;;  %v1022_v6 = vld [vmem:[#allocation2 + $0x10] sm:$0xff]  ;;  %v1024_v7 = vld [vmem:[#allocation2 + $0x20] sm:$0xff] }
   0xe   :  { %v1026_v8 = vld [vmem:[#allocation2 + $0x28] sm:$0xff]  ;;  %v1028_v9 = vld [vmem:[#allocation2 + $0x18] sm:$0xff]  ;;  %s989_s0 = smov 32   ;;  %s990_s1 = smov 96   ;;  %v80_v12 = vrot.slane %v1022_v6, 1  ;;  %v83_v14 = vrot.slane %v1024_v7, 1 }
   0xf   :  { %v225_v10 = vsel %vm222_vm0, %v223_v2, %v224_v3  ;;  %v79_v11 = vsel %vm76_vm1, %v77_v4, %v78_v5  ;;  %103 = vrot.lane.b32.xlu2 %v78_v5, %s989_s0  ;;  %v81_v13 = vrot.slane %v1028_v9, 1  ;;  %v84_v15 = vrot.slane %v1026_v8, 1  ;;  %s991_s21 = smov 64   ;;  %v1068_v33 = vld [vmem:[#allocation2 + $0x30] sm:$0xff]  ;;  %v1070_v34 = vld [vmem:[#allocation2 + $0x38] sm:$0xff]  ;;  %v1075_v35 = vld [vmem:[#allocation2 + $0x48] sm:$0xff] }
  0x10   :  { %247 = vrot.lane.b32.xlu1 %v225_v10, %s990_s1  ;;  %101 = vrot.lane.b32.xlu0 %v79_v11, %s989_s0  ;;  %v150_v16 = vrot.slane %v1014_v0, 2  ;;  %v151_v17 = vrot.slane %v1016_v1, 2  ;;  %vm149_vm2 = vcmask 1045504   ;;  %v153_v21 = vrot.slane %v1022_v6, 2  ;;  %v1081_v40 = vld [vmem:[#allocation2 + $0x50] sm:$0xff]  ;;  %v1083_v41 = vld [vmem:[#allocation2 + $0x58] sm:$0xff] }
  0x11   :  { %v82_v18 = vsel %vm76_vm1, %v80_v12, %v81_v13  ;;  %v85_v19 = vsel %vm76_vm1, %v83_v14, %v84_v15  ;;  %v154_v22 = vrot.slane %v1028_v9, 2  ;;  %v156_v23 = vrot.slane %v1024_v7, 2  ;;  %v1120_v59 = vld [vmem:[#allocation2 + $0x40] sm:$0xff]  ;;  %v1122_v60 = vld [vmem:[#allocation2 + $0x70] sm:$0xff]  ;;  %v1124_v61 = vld [vmem:[#allocation2 + $0x78] sm:$0xff]  ;;  %s992_s22 = smov [#allocation7]  }
  0x12   :  { %v152_v20 = vsel %vm149_vm2, %v150_v16, %v151_v17  ;;  %v157_v24 = vrot.slane %v1026_v8, 2  ;;  %v226_v27 = vrot.slane %v1022_v6, 3  ;;  %v227_v28 = vrot.slane %v1028_v9, 3  ;;  %v385_v14 = vld [vmem:[#allocation5 + $0x70] sm:$0xff]  ;;  %v384_v16 = vld [vmem:[#allocation5 + $0x68] sm:$0xff]  ;;  %s838_s23 = sshll.u32 %s992_s22, 4  ;;  %s839_s23 = int_to_ptr.vmem [resolvable:$true] %s838_s23 }
  0x13   :  { %v155_v25 = vsel %vm149_vm2, %v153_v21, %v154_v22  ;;  %v229_v29 = vrot.slane %v1024_v7, 3  ;;  %v230_v30 = vrot.slane %v1026_v8, 3  ;;  %v86_v36 = vrot.slane %v1068_v33, 1  ;;  %s840_s26 = sshll.u32 %s1383_s2, 4  ;;  %s841_s26 = int_to_ptr.hbm [resolvable:$true] %s840_s26 }
  0x14   :  { %v158_v26 = vsel %vm149_vm2, %v156_v23, %v157_v24  ;;  %v228_v31 = vsel %vm222_vm0, %v226_v27, %v227_v28  ;;  %v87_v37 = vrot.slane %v1070_v34, 1  ;;  %v90_v38 = vrot.slane %v1075_v35, 1  ;;  %v380_v23 = vld [vmem:[#allocation5 + $0x48] sm:$0xff] }
  0x15   :  { %v231_v32 = vsel %vm222_vm0, %v229_v29, %v230_v30  ;;  %v159_v42 = vrot.slane %v1068_v33, 2  ;;  %v160_v43 = vrot.slane %v1070_v34, 2  ;;  %v92_v44 = vrot.slane %v1081_v40, 1  ;;  %v377_v29 = vld [vmem:[#allocation5 + $0x30] sm:$0xff] }
  0x16   :  { %v88_v39 = vsel %vm76_vm1, %v86_v36, %v87_v37  ;;  %v93_v45 = vrot.slane %v1083_v41, 1  ;;  %v165_v48 = vrot.slane %v1081_v40, 2  ;;  %v166_v49 = vrot.slane %v1083_v41, 2  ;;  %v374_v36 = vld [vmem:[#allocation5 + $0x18] sm:$0xff] }
  0x17   :  { %105 = vrot.lane.b32.xlu2 %v82_v18, %s989_s0  ;;  %v161_v46 = vsel %vm149_vm2, %v159_v42, %v160_v43  ;;  %v163_v50 = vrot.slane %v1075_v35, 2  ;;  %v232_v52 = vrot.slane %v1068_v33, 3  ;;  %v233_v53 = vrot.slane %v1070_v34, 3  ;;  %v383_v18 = vld [vmem:[#allocation5 + $0x60] sm:$0xff]  ;;  %v1171_v42 = vld [vmem:[#allocation5 + $0x90] sm:$0xff] }
  0x18   :  { %109 = vrot.lane.b32.xlu1 %v85_v19, %s989_s0  ;;  %174 = vrot.lane.b32.xlu0 %v152_v20, %s991_s21  ;;  %v94_v47 = vsel %vm76_vm1, %v92_v44, %v93_v45  ;;  %v167_v51 = vsel %vm149_vm2, %v165_v48, %v166_v49  ;;  %v238_v55 = vrot.slane %v1081_v40, 3  ;;  %v239_v56 = vrot.slane %v1083_v41, 3  ;;  %v382_v19 = vld [vmem:[#allocation5 + $0x58] sm:$0xff]  ;;  %v388_v44 = vld [vmem:[#allocation5 + $0x88] sm:$0xff]  ;;  %v387_v48 = vld [vmem:[#allocation5 + $0x80] sm:$0xff] }
  0x19   :  { %v234_v54 = vsel %vm222_vm0, %v232_v52, %v233_v53  ;;  %v236_v57 = vrot.slane %v1075_v35, 3  ;;  %v171_v62 = vrot.slane %v1122_v60, 2  ;;  %v172_v63 = vrot.slane %v1124_v61, 2 }
  0x1a   :  { %v240_v58 = vsel %vm222_vm0, %v238_v55, %v239_v56  ;;  %v89_v2 = vrot.slane %v1120_v59, 1  ;;  %v99_v4 = vrot.slane %v1124_v61, 1  ;;  %v162_v12 = vrot.slane %v1120_v59, 2 }
  0x1b   :  { %v173_v5 = vsel %vm149_vm2, %v171_v62, %v172_v63  ;;  %v244_v20 = vrot.slane %v1122_v60, 3  ;;  %v245_v21 = vrot.slane %v1124_v61, 3  ;;  %v235_v27 = vrot.slane %v1120_v59, 3 }
  0x1c   :  { %v91_v10 = vsel %vm76_vm1, %v89_v2, %v90_v38  ;;  %vm320_vm3 = vcmask 261120   ;;  %vm295_vm4 = vcmask 1043456   ;;  %vm337_vm5 = vcmask 523264  }
  0x1d   :  { %vm354_vm6 = vcmask 785408   ;;  %vm817_vm7 = vcmask 1041409   ;;  %vm819_vm8 = vcmask 1042434   ;;  %vm821_vm9 = vcmask 1043459  }
  0x1e   :  { %vm823_vm10 = vcmask 1044484   ;;  %vm825_vm11 = vcmask 1045509   ;;  %vm827_vm12 = vcmask 1046534   ;;  %vm829_vm13 = vcmask 1047559  }
  0x1f   :  { %178 = vrot.lane.b32.xlu2 %v155_v25, %s991_s21  ;;  %v379_v25 = vld [vmem:[#allocation5 + $0x40] sm:$0xff] }
  0x20   :  { %176 = vrot.lane.b32.xlu1 %v151_v17, %s991_s21  ;;  %182 = vrot.lane.b32.xlu0 %v158_v26, %s991_s21  ;;  %v164_v17 = vsel %vm149_vm2, %v162_v12, %v163_v50  ;;  %v246_v26 = vsel %vm222_vm0, %v244_v20, %v245_v21  ;;  %v297_v12 = vrot.slane %v1016_v1, 4 }
  0x27   :  { %251 = vrot.lane.b32.xlu2 %v228_v31, %s990_s1  ;;  %v376_v31 = vld [vmem:[#allocation5 + $0x28] sm:$0xff] }
  0x28   :  { %249 = vrot.lane.b32.xlu1 %v224_v3, %s990_s1  ;;  %255 = vrot.lane.b32.xlu0 %v231_v32, %s990_s1  ;;  %v98_v3 = vrot.slane %v1122_v60, 1  ;;  %v237_v32 = vsel %vm222_vm0, %v235_v27, %v236_v57 }
  0x2a   :  { %v100_v11 = vsel %vm76_vm1, %v98_v3, %v99_v4 }
  0x2f   :  { %119 = vrot.lane.b32.xlu2 %v90_v38, %s989_s0 }
  0x30   :  { %113 = vrot.lane.b32.xlu1 %v88_v39, %s989_s0  ;;  %107 = vrot.lane.b32.xlu0 %v81_v13, %s989_s0  ;;  %v386_v13 = vld [vmem:[#allocation5 + $0x78] sm:$0xff]  ;;  %v373_v39 = vld [vmem:[#allocation5 + $0x10] sm:$0xff] }
  0x31   :  { %546 = vmatpush.msra.mxu0 %v386_v13  ;;  %863 = vmatpush.msra.mxu2 %v386_v13 }
  0x32   :  { %864 = vmatpush.msra.mxu3 %v386_v13 }
  0x33   :  { %547 = vmatpush.msra.mxu0 %v385_v14  ;;  %865 = vmatpush.msra.mxu2 %v385_v14 }
  0x34   :  { %866 = vmatpush.msra.mxu3 %v385_v14 }
  0x35   :  { %548 = vmatpush.msra.mxu0 %v384_v16  ;;  %867 = vmatpush.msra.mxu2 %v384_v16 }
  0x36   :  { %868 = vmatpush.msra.mxu3 %v384_v16 }
  0x37   :  { %186 = vrot.lane.b32.xlu2 %v161_v46, %s991_s21  ;;  %549 = vmatpush.msra.mxu0 %v383_v18  ;;  %v1176_v46 = vld [vmem:[#allocation2 + $0x68] sm:$0xff] }
  0x38   :  { %180 = vrot.lane.b32.xlu1 %v154_v22, %s991_s21  ;;  %121 = vrot.lane.b32.xlu0 %v94_v47, %s989_s0  ;;  %v381_v22 = vld [vmem:[#allocation5 + $0x50] sm:$0xff]  ;;  %v371_v47 = vld [vmem:[#allocation5] sm:$0xff]  ;;  %v96_v55 = vrot.slane %v1176_v46, 1 }
  0x39   :  { %550 = vmatpush.msra.mxu0 %v382_v19  ;;  %869 = vmatpush.msra.mxu2 %v383_v18 }
  0x3a   :  { %870 = vmatpush.msra.mxu3 %v383_v18 }
  0x3b   :  { %551 = vmatpush.msra.mxu0 %v381_v22  ;;  %871 = vmatpush.msra.mxu2 %v382_v19 }
  0x3c   :  { %872 = vmatpush.msra.mxu3 %v382_v19 }
  0x3d   :  { %552 = vmatpush.msra.mxu0 %v380_v23  ;;  %873 = vmatpush.msra.mxu2 %v381_v22 }
  0x3e   :  { %874 = vmatpush.msra.mxu3 %v381_v22 }
  0x3f   :  { %194 = vrot.lane.b32.xlu2 %v167_v51, %s991_s21  ;;  %553 = vmatpush.msra.mxu0 %v379_v25  ;;  %v300_v51 = vrot.slane %v1028_v9, 4 }
  0x40   :  { %192 = vrot.lane.b32.xlu1 %v163_v50, %s991_s21  ;;  %115 = vrot.lane.b32.xlu0 %v87_v37, %s989_s0  ;;  %v1168_v37 = vld [vmem:[#allocation5 + $0x98] sm:$0xff]  ;;  %v299_v50 = vrot.slane %v1022_v6, 4 }
  0x41   :  { %875 = vmatpush.msra.mxu2 %v380_v23  ;;  %876 = vmatpush.msra.mxu3 %v380_v23 }
  0x42   :  { %611 = vmatpush.msra.mxu1 %v1168_v37 }
  0x43   :  { %877 = vmatpush.msra.mxu2 %v379_v25  ;;  %878 = vmatpush.msra.mxu3 %v379_v25 }
  0x44   :  { %612 = vmatpush.msra.mxu1 %v1171_v42 }
  0x46   :  { %613 = vmatpush.msra.mxu1 %v388_v44 }
  0x47   :  { %188 = vrot.lane.b32.xlu2 %v160_v43, %s991_s21  ;;  %v372_v43 = vld [vmem:[#allocation5 + $0x8] sm:$0xff] }
  0x48   :  { %259 = vrot.lane.b32.xlu1 %v234_v54, %s990_s1  ;;  %253 = vrot.lane.b32.xlu0 %v227_v28, %s990_s1 }
  0x49   :  { %614 = vmatpush.msra.mxu1 %v387_v48 }
  0x4f   :  { %261 = vrot.lane.b32.xlu2 %v233_v53, %s990_s1  ;;  %v242_v53 = vrot.slane %v1176_v46, 3 }
  0x50   :  { %267 = vrot.lane.b32.xlu1 %v240_v58, %s990_s1  ;;  %265 = vrot.lane.b32.xlu0 %v236_v57, %s990_s1  ;;  %v301_v58 = vsel %vm295_vm4, %v299_v50, %v300_v51 }
  0x57   :  { %202 = vrot.lane.b32.xlu2 %v173_v5, %s991_s21 }
  0x58   :  { %117 = vrot.lane.b32.xlu1 %v91_v10, %s989_s0  ;;  %129 = vrot.lane.b32.xlu0 %v100_v11, %s989_s0  ;;  %v296_v11 = vrot.slane %v1014_v0, 4 }
  0x5a   :  { %v298_v18 = vsel %vm295_vm4, %v296_v11, %v297_v12 }
  0x5b   :  { %v407_v19 = vrot.slane %v298_v18, 4 }
  0x5f   :  { %190 = vrot.lane.b32.xlu2 %v164_v17, %s991_s21 }
  0x60   :  { %131 = vrot.lane.b32.xlu1 %v99_v4, %s989_s0  ;;  %111 = vrot.lane.b32.xlu0 %v84_v15, %s989_s0  ;;  %v378_v15 = vld [vmem:[#allocation5 + $0x38] sm:$0xff]  ;;  %v409_v4 = vrot.slane %v301_v58, 4 }
  0x61   :  { %554 = vmatpush.msra.mxu0 %v378_v15  ;;  %879 = vmatpush.msra.mxu2 %v378_v15 }
  0x62   :  { %880 = vmatpush.msra.mxu3 %v378_v15 }
  0x63   :  { %555 = vmatpush.msra.mxu0 %v377_v29  ;;  %881 = vmatpush.msra.mxu2 %v377_v29 }
  0x64   :  { %882 = vmatpush.msra.mxu3 %v377_v29 }
  0x65   :  { %556 = vmatpush.msra.mxu0 %v376_v31  ;;  %883 = vmatpush.msra.mxu2 %v376_v31 }
  0x66   :  { %884 = vmatpush.msra.mxu3 %v376_v31  ;;  %v302_v31 = vrot.slane %v1024_v7, 4 }
  0x67   :  { %204 = vrot.lane.b32.xlu2 %v172_v63, %s991_s21 }
  0x68   :  { %184 = vrot.lane.b32.xlu1 %v157_v24, %s991_s21  ;;  %275 = vrot.lane.b32.xlu0 %v246_v26, %s990_s1  ;;  %v375_v24 = vld [vmem:[#allocation5 + $0x20] sm:$0xff] }
  0x69   :  { %v1158_v28 = vpop.permute.xlu2 %103  ;;  %557 = vmatpush.msra.mxu0 %v375_v24  ;;  %885 = vmatpush.msra.mxu2 %v375_v24 }
  0x6a   :  { %886 = vmatpush.msra.mxu3 %v375_v24 }
  0x6b   :  { %558 = vmatpush.msra.mxu0 %v374_v36  ;;  %887 = vmatpush.msra.mxu2 %v374_v36 }
  0x6c   :  { %888 = vmatpush.msra.mxu3 %v374_v36 }
  0x6d   :  { %559 = vmatpush.msra.mxu0 %v373_v39  ;;  %889 = vmatpush.msra.mxu2 %v373_v39 }
  0x6e   :  { %890 = vmatpush.msra.mxu3 %v373_v39 }
  0x6f   :  { %277 = vrot.lane.b32.xlu2 %v245_v21, %s990_s1  ;;  %560 = vmatpush.msra.mxu0 %v372_v43 }
  0x70   :  { %257 = vrot.lane.b32.xlu1 %v230_v30, %s990_s1  ;;  %263 = vrot.lane.b32.xlu0 %v237_v32, %s990_s1  ;;  %v1174_v30 = vld [vmem:[#allocation2 + $0x60] sm:$0xff]  ;;  %v303_v32 = vrot.slane %v1026_v8, 4 }
  0x71   :  { %v106_v38 = vpop.permute.xlu2 %105  ;;  %561 = vmatpush.msra.mxu0 %v371_v47  ;;  %v241_v52 = vrot.slane %v1174_v30, 3  ;;  %v95_v54 = vrot.slane %v1174_v30, 1  ;;  %891 = vmatpush.msra.mxu2 %v372_v43 }
  0x72   :  { %892 = vmatpush.msra.mxu3 %v372_v43 }
  0x73   :  { %v243_v62 = vsel %vm222_vm0, %v241_v52, %v242_v53  ;;  %v97_v63 = vsel %vm76_vm1, %v95_v54, %v96_v55  ;;  %893 = vmatpush.msra.mxu2 %v371_v47 }
  0x74   :  { %894 = vmatpush.msra.mxu3 %v371_v47 }
  0x76   :  { %895 = vmatpush.msrb.mxu3 %v1168_v37  ;;  %v304_v37 = vsel %vm295_vm4, %v302_v31, %v303_v32 }
  0x77   :  { %269 = vrot.lane.b32.xlu2 %v239_v56, %s990_s1  ;;  %v168_v56 = vrot.slane %v1174_v30, 2  ;;  %v411_v43 = vrot.slane %v304_v37, 4  ;;  %v309_v37 = vrot.slane %v1075_v35, 4 }
  0x78   :  { %123 = vrot.lane.b32.xlu0 %v93_v45, %s989_s0  ;;  %196 = vrot.lane.b32.xlu1 %v166_v49, %s991_s21  ;;  %v169_v45 = vrot.slane %v1176_v46, 2  ;;  %v323_v49 = vsel %vm320_vm3, %v1022_v6, %v106_v38 }
  0x79   :  { %v179_v57 = vpop.permute.xlu2 %178  ;;  %896 = vmatpush.msrb.mxu3 %v1171_v42  ;;  %v408_v42 = vrot.slane %v297_v12, 4 }
  0x7a   :  { %v170_v2 = vsel %vm149_vm2, %v168_v56, %v169_v45  ;;  %v340_v3 = vsel %vm337_vm5, %v323_v49, %v179_v57 }
  0x7b   :  { %897 = vmatpush.msrb.mxu3 %v388_v44  ;;  %v322_v44 = vsel %vm320_vm3, %v1016_v1, %v1158_v28 }
  0x7d   :  { %898 = vmatpush.msrb.mxu3 %v387_v48 }
  0x7f   :  { %271 = vrot.lane.b32.xlu2 %v243_v62, %s990_s1 }
  0x80   :  { %125 = vrot.lane.b32.xlu0 %v97_v63, %s989_s0  ;;  %198 = vrot.lane.b32.xlu1 %v170_v2, %s991_s21 }
  0x81   :  { %v252_v6 = vpop.permute.xlu2 %251 }
  0x82   :  { %v248_v5 = vpop.permute.xlu1 %247  ;;  %v102_v10 = vpop.permute.xlu0 %101  ;;  %v357_v13 = vsel %vm354_vm6, %v340_v3, %v252_v6  ;;  %v306_v6 = vrot.slane %v1070_v34, 4 }
  0x83   :  { %v427_v14 = vsel %vm295_vm4, %v357_v13, %v409_v4  ;;  %v428_v16 = vsel %vm295_vm4, %v409_v4, %v357_v13  ;;  %v321_v21 = vsel %vm320_vm3, %v1014_v0, %v102_v10 }
  0x84   :  { %v429_v17 = vrot.slane %v428_v16, 4  ;;  %461 = vst [vmem:[#allocation1 + $0x11] ss:$2 sm:$0xff] %v427_v14  ;;  %v414_v12 = vrot.slane %v306_v6, 4 }
  0x86   :  { %463 = vst [vmem:[#allocation1 + $0x20] ss:$2 sm:$0xff] %v429_v17 }
  0x87   :  { %273 = vrot.lane.b32.xlu2 %v242_v53, %s990_s1 }
  0x88   :  { %127 = vrot.lane.b32.xlu0 %v96_v55, %s989_s0  ;;  %200 = vrot.lane.b32.xlu1 %v169_v45, %s991_s21 }
  0x89   :  { %v1218_v20 = vpop.permute.xlu2 %119 }
  0x8a   :  { %v110_v22 = vpop.permute.xlu1 %109  ;;  %v175_v23 = vpop.permute.xlu0 %174 }
  0x8b   :  { %v338_v25 = vsel %vm337_vm5, %v321_v21, %v175_v23  ;;  %v325_v47 = vsel %vm320_vm3, %v1024_v7, %v110_v22  ;;  %v410_v23 = vrot.slane %v300_v51, 4 }
  0x8c   :  { %v355_v26 = vsel %vm354_vm6, %v338_v25, %v248_v5  ;;  %v305_v5 = vrot.slane %v1068_v33, 4  ;;  %v311_v25 = vrot.slane %v1081_v40, 4 }
  0x8d   :  { %v423_v15 = vsel %vm295_vm4, %v355_v26, %v407_v19  ;;  %v424_v27 = vsel %vm295_vm4, %v407_v19, %v355_v26  ;;  %v312_v26 = vrot.slane %v1083_v41, 4 }
  0x8e   :  { %v425_v29 = vrot.slane %v424_v27, 4  ;;  %455 = vst [vmem:[#allocation1] ss:$2 sm:$0xff] %v423_v15  ;;  %v307_v18 = vsel %vm295_vm4, %v305_v5, %v306_v6 }
  0x8f   :  { %v413_v22 = vrot.slane %v307_v18, 4 }
  0x90   :  { %457 = vst [vmem:[#allocation1 + $0x1] ss:$2 sm:$0xff] %v425_v29 }
  0x91   :  { %v187_v24 = vpop.permute.xlu2 %186 }
  0x92   :  { %v177_v36 = vpop.permute.xlu1 %176  ;;  %v183_v0 = vpop.permute.xlu0 %182 }
  0x93   :  { %v339_v50 = vsel %vm337_vm5, %v322_v44, %v177_v36  ;;  %v342_v52 = vsel %vm337_vm5, %v325_v47, %v183_v0  ;;  %v416_v44 = vrot.slane %v309_v37, 4  ;;  %v330_v47 = vsel %vm320_vm3, %v1075_v35, %v1218_v20 }
  0x97   :  { %v470_v38 = vld.sshfl [vmem:[#allocation1] sm:$0xff pattern:$0x75316420]  ;;  %v471_v39 = vld.sshfl [vmem:[#allocation1 + $0x8] sm:$0xff pattern:$0x75316420] }
  0x98   :  { %562 = vmatmul.f32.vlgmr.msra.gmra.mxu0 %v470_v38  ;;  %851 = vmatmul.msk.f32.vlgmr.msra.gmra.mxu1 %vm320_vm3, %v471_v39 }
  0x99   :  { %v1237_v48 = vpop.permute.xlu2 %194 }
  0x9a   :  { %v250_v53 = vpop.permute.xlu1 %249  ;;  %v256_v54 = vpop.permute.xlu0 %255 }
  0x9b   :  { %v356_v55 = vsel %vm354_vm6, %v339_v50, %v250_v53  ;;  %v359_v56 = vsel %vm354_vm6, %v342_v52, %v256_v54 }
  0x9c   :  { %v426_v45 = vsel %vm295_vm4, %v356_v55, %v408_v42  ;;  %v431_v57 = vsel %vm295_vm4, %v359_v56, %v411_v43  ;;  %v432_v1 = vsel %vm295_vm4, %v411_v43, %v359_v56 }
  0x9d   :  { %459 = vst [vmem:[#allocation1 + $0x10] ss:$2 sm:$0xff] %v426_v45  ;;  %v433_v7 = vrot.slane %v432_v1, 4 }
  0x9e   :  { %467 = vst [vmem:[#allocation1 + $0x30] ss:$2 sm:$0xff] %v431_v57 }
  0x9f   :  { %469 = vst [vmem:[#allocation1 + $0x31] ss:$2 sm:$0xff] %v433_v7 }
  0xa1   :  { %v189_v28 = vpop.permute.xlu2 %188 }
  0xa2   :  { %v114_v49 = vpop.permute.xlu1 %113  ;;  %v108_v58 = vpop.permute.xlu0 %107 }
  0xa3   :  { %v327_v21 = vsel %vm320_vm3, %v1068_v33, %v114_v49 }
  0xa4   :  { %v472_v62 = vld.sshfl [vmem:[#allocation1 + $0x10] sm:$0xff pattern:$0x75316420]  ;;  %v473_v63 = vld.sshfl [vmem:[#allocation1 + $0x18] sm:$0xff pattern:$0x75316420]  ;;  %v344_v27 = vsel %vm337_vm5, %v327_v21, %v187_v24  ;;  %v1276_v24 = vsel %vm295_vm4, %v311_v25, %v312_v26 }
  0xa5   :  { %565 = vmatmul.f32.gmra.mxu0 %v472_v62  ;;  %852 = vmatmul.msk.f32.gmra.mxu1 %vm320_vm3, %v473_v63  ;;  %v417_v43 = vrot.slane %v1276_v24, 4  ;;  %v317_v63 = vrot.slane %v1122_v60, 4 }
  0xa6   :  { %v476_v45 = vld.sshfl [vmem:[#allocation1 + $0x30] sm:$0xff pattern:$0x75316420]  ;;  %v477_v57 = vld.sshfl [vmem:[#allocation1 + $0x38] sm:$0xff pattern:$0x75316420] }
  0xa9   :  { %v262_v2 = vpop.permute.xlu2 %261 }
  0xaa   :  { %v181_v3 = vpop.permute.xlu1 %180  ;;  %v122_v4 = vpop.permute.xlu0 %121 }
  0xab   :  { %v331_v42 = vsel %vm320_vm3, %v1081_v40, %v122_v4 }
  0xac   :  { %v348_v53 = vsel %vm337_vm5, %v331_v42, %v1237_v48 }
  0xb1   :  { %v1251_v14 = vpop.permute.xlu2 %202 }
  0xb2   :  { %v193_v10 = vpop.permute.xlu1 %192  ;;  %v116_v11 = vpop.permute.xlu0 %115 }
  0xb3   :  { %v328_v13 = vsel %vm320_vm3, %v1070_v34, %v116_v11  ;;  %v324_v34 = vsel %vm320_vm3, %v1028_v9, %v108_v58  ;;  %v347_v50 = vsel %vm337_vm5, %v330_v47, %v193_v10  ;;  %v318_v58 = vrot.slane %v1124_v61, 4 }
  0xb4   :  { %v345_v16 = vsel %vm337_vm5, %v328_v13, %v189_v28  ;;  %v341_v15 = vsel %vm337_vm5, %v324_v34, %v181_v3 }
  0xb5   :  { %v362_v17 = vsel %vm354_vm6, %v345_v16, %v262_v2  ;;  %v422_v4 = vrot.slane %v318_v58, 4  ;;  %v319_v11 = vsel %vm295_vm4, %v317_v63, %v318_v58 }
  0xb6   :  { %v438_v19 = vsel %vm295_vm4, %v362_v17, %v414_v12  ;;  %v421_v18 = vrot.slane %v319_v11, 4 }
  0xb7   :  { %481 = vst [vmem:[#allocation1 + $0x11] ss:$2 sm:$0xff] %v438_v19  ;;  %v308_v19 = vrot.slane %v1120_v59, 4 }
  0xb9   :  { %v191_v39 = vpop.permute.xlu2 %190 }
  0xba   :  { %v260_v29 = vpop.permute.xlu1 %259  ;;  %v254_v31 = vpop.permute.xlu0 %253 }
  0xbb   :  { %v361_v33 = vsel %vm354_vm6, %v344_v27, %v260_v29  ;;  %v358_v36 = vsel %vm354_vm6, %v341_v15, %v254_v31  ;;  %v310_v15 = vsel %vm295_vm4, %v308_v19, %v309_v37 }
  0xbc   :  { %v435_v0 = vsel %vm295_vm4, %v361_v33, %v413_v22  ;;  %v436_v51 = vsel %vm295_vm4, %v413_v22, %v361_v33  ;;  %v430_v9 = vsel %vm295_vm4, %v358_v36, %v410_v23  ;;  %v415_v29 = vrot.slane %v310_v15, 4 }
  0xbd   :  { %v437_v38 = vrot.slane %v436_v51, 4  ;;  %479 = vst [vmem:[#allocation1 + $0x1] ss:$2 sm:$0xff] %v435_v0 }
  0xbe   :  { %465 = vst [vmem:[#allocation1 + $0x21] ss:$2 sm:$0xff] %v430_v9 }
  0xbf   :  { %480 = vst [vmem:[#allocation1 + $0x10] ss:$2 sm:$0xff] %v437_v38 }
  0xc1   :  { %v205_v7 = vpop.permute.xlu2 %204 }
  0xc2   :  { %v268_v52 = vpop.permute.xlu1 %267  ;;  %v266_v54 = vpop.permute.xlu0 %265 }
  0xc3   :  { %v1288_v55 = vsel %vm354_vm6, %v348_v53, %v268_v52  ;;  %v364_v40 = vsel %vm354_vm6, %v347_v50, %v266_v54  ;;  %v418_v50 = vrot.slane %v312_v26, 4  ;;  %v314_v54 = vrot.slane %v1174_v30, 4 }
  0xc4   :  { %v443_v56 = vsel %vm295_vm4, %v1288_v55, %v417_v43  ;;  %v442_v35 = vsel %vm295_vm4, %v364_v40, %v416_v44  ;;  %v315_v40 = vrot.slane %v1176_v46, 4 }
  0xc5   :  { %v474_v20 = vld.sshfl [vmem:[#allocation1 + $0x20] sm:$0xff pattern:$0x75316420]  ;;  %v475_v1 = vld.sshfl [vmem:[#allocation1 + $0x28] sm:$0xff pattern:$0x75316420] }
  0xc6   :  { %485 = vst [vmem:[#allocation1 + $0x31] ss:$2 sm:$0xff] %v443_v56  ;;  %568 = vmatmul.f32.gmra.mxu0 %v474_v20  ;;  %853 = vmatmul.msk.f32.gmra.mxu1 %vm320_vm3, %v475_v1  ;;  %v488_v48 = vld.sshfl [vmem:[#allocation1 + $0x10] sm:$0xff pattern:$0x75316420] }
  0xc7   :  { %484 = vst [vmem:[#allocation1 + $0x30] ss:$2 sm:$0xff] %v442_v35  ;;  %577 = vmatmul.f32.vlgmr.msra.gmra.mxu2 %v488_v48  ;;  %v316_v35 = vsel %vm295_vm4, %v314_v54, %v315_v40  ;;  %v489_v58 = vld.sshfl [vmem:[#allocation1 + $0x18] sm:$0xff pattern:$0x75316420] }
  0xc9   :  { %v278_v62 = vpop.permute.xlu2 %277 }
  0xca   :  { %v118_v28 = vpop.permute.xlu1 %117  ;;  %v130_v49 = vpop.permute.xlu0 %129 }
  0xcb   :  { %v335_v17 = vsel %vm320_vm3, %v1122_v60, %v130_v49  ;;  %v329_v27 = vsel %vm320_vm3, %v1120_v59, %v118_v28  ;;  %v412_v60 = vrot.slane %v303_v32, 4 }
  0xcc   :  { %v352_v21 = vsel %vm337_vm5, %v335_v17, %v1251_v14  ;;  %v346_v36 = vsel %vm337_vm5, %v329_v27, %v191_v39  ;;  %v444_v39 = vsel %vm295_vm4, %v417_v43, %v1288_v55 }
  0xcd   :  { %v445_v52 = vrot.slane %v444_v39, 4 }
  0xce   :  { %571 = vmatmul.f32.gmra.mxu0 %v476_v45  ;;  %854 = vmatmul.msk.f32.gmra.mxu1 %vm320_vm3, %v477_v57  ;;  %v1306_v13 = vld.sshfl [vmem:[#allocation1 + $0x30] sm:$0xff pattern:$0x75316420]  ;;  %v1308_v16 = vld.sshfl [vmem:[#allocation1 + $0x38] sm:$0xff pattern:$0x75316420] }
  0xd1   :  { %v270_v42 = vpop.permute.xlu2 %269 }
  0xd2   :  { %v132_v2 = vpop.permute.xlu1 %131  ;;  %v112_v3 = vpop.permute.xlu0 %111 }
  0xd3   :  { %v336_v6 = vsel %vm320_vm3, %v1124_v61, %v132_v2  ;;  %v326_v31 = vsel %vm320_vm3, %v1026_v8, %v112_v3 }
  0xd4   :  { %v353_v5 = vsel %vm337_vm5, %v336_v6, %v205_v7  ;;  %v419_v7 = vrot.slane %v316_v35, 4 }
  0xd5   :  { %v370_v10 = vsel %vm354_vm6, %v353_v5, %v278_v62 }
  0xd6   :  { %v454_v12 = vsel %vm295_vm4, %v370_v10, %v422_v4  ;;  %v420_v10 = vrot.slane %v315_v40, 4 }
  0xd7   :  { %501 = vst [vmem:[#allocation1 + $0x31] ss:$2 sm:$0xff] %v454_v12 }
  0xd9   :  { %v272_v20 = vpop.permute.xlu2 %271 }
  0xda   :  { %v185_v61 = vpop.permute.xlu1 %184  ;;  %v276_v22 = vpop.permute.xlu0 %275 }
  0xdb   :  { %v369_v23 = vsel %vm354_vm6, %v352_v21, %v276_v22  ;;  %v343_v14 = vsel %vm337_vm5, %v326_v31, %v185_v61 }
  0xdc   :  { %v452_v34 = vsel %vm295_vm4, %v421_v18, %v369_v23  ;;  %v451_v26 = vsel %vm295_vm4, %v369_v23, %v421_v18 }
  0xdd   :  { %v453_v25 = vrot.slane %v452_v34, 4 }
  0xdf   :  { %500 = vst [vmem:[#allocation1 + $0x30] ss:$2 sm:$0xff] %v453_v25 }
  0xe2   :  { %v258_v33 = vpop.permute.xlu1 %257  ;;  %v264_v0 = vpop.permute.xlu0 %263 }
  0xe3   :  { %v360_v51 = vsel %vm354_vm6, %v343_v14, %v258_v33  ;;  %v363_v9 = vsel %vm354_vm6, %v346_v36, %v264_v0 }
  0xe4   :  { %v434_v59 = vsel %vm295_vm4, %v360_v51, %v412_v60  ;;  %v439_v37 = vsel %vm295_vm4, %v363_v9, %v415_v29  ;;  %v440_v32 = vsel %vm295_vm4, %v415_v29, %v363_v9 }
  0xe5   :  { %478 = vst [vmem:[#allocation1] ss:$2 sm:$0xff] %v434_v59  ;;  %v441_v38 = vrot.slane %v440_v32, 4 }
  0xe6   :  { %482 = vst [vmem:[#allocation1 + $0x20] ss:$2 sm:$0xff] %v439_v37  ;;  %v508_v8 = vld.sshfl [vmem:[#allocation1 + $0x30] sm:$0xff pattern:$0x75316420] }
  0xe7   :  { %483 = vst [vmem:[#allocation1 + $0x21] ss:$2 sm:$0xff] %v441_v38  ;;  %595 = vmatmul.f32.vlgmr.msra.gmra.mxu3 %v508_v8  ;;  %v509_v22 = vld.sshfl [vmem:[#allocation1 + $0x38] sm:$0xff pattern:$0x75316420] }
  0xea   :  { %v124_v44 = vpop.permute.xlu0 %123  ;;  %v197_v47 = vpop.permute.xlu1 %196 }
  0xeb   :  { %v332_v53 = vsel %vm320_vm3, %v1083_v41, %v124_v44 }
  0xec   :  { %v486_v56 = vld.sshfl [vmem:[#allocation1] sm:$0xff pattern:$0x75316420]  ;;  %v487_v45 = vld.sshfl [vmem:[#allocation1 + $0x8] sm:$0xff pattern:$0x75316420]  ;;  %v349_v57 = vsel %vm337_vm5, %v332_v53, %v197_v47 }
  0xed   :  { %494 = vst [vmem:[#allocation1] ss:$2 sm:$0xff] %v445_v52  ;;  %v366_v24 = vsel %vm354_vm6, %v349_v57, %v270_v42  ;;  %574 = vmatmul.f32.gmra.mxu0 %v486_v56  ;;  %855 = vmatmul.msk.f32.gmra.mxu1 %vm320_vm3, %v487_v45 }
  0xee   :  { %v490_v43 = vld.sshfl [vmem:[#allocation1 + $0x20] sm:$0xff pattern:$0x75316420]  ;;  %v491_v55 = vld.sshfl [vmem:[#allocation1 + $0x28] sm:$0xff pattern:$0x75316420]  ;;  %v446_v41 = vsel %vm295_vm4, %v366_v24, %v418_v50 }
  0xef   :  { %499 = vst [vmem:[#allocation1 + $0x21] ss:$2 sm:$0xff] %v451_v26  ;;  %580 = vmatmul.f32.gmra.mxu2 %v490_v43 }
  0xf0   :  { %495 = vst [vmem:[#allocation1 + $0x1] ss:$2 sm:$0xff] %v446_v41 }
  0xf2   :  { %v126_v1 = vpop.permute.xlu0 %125  ;;  %v199_v48 = vpop.permute.xlu1 %198 }
  0xf3   :  { %v333_v28 = vsel %vm320_vm3, %v1174_v30, %v126_v1  ;;  %v274_v30 = vpop.permute.xlu2 %273 }
  0xf4   :  { %v350_v49 = vsel %vm337_vm5, %v333_v28, %v199_v48 }
  0xf5   :  { %v367_v62 = vsel %vm354_vm6, %v350_v49, %v272_v20  ;;  %856 = vmatmul.msk.f32.gmra.mxu1 %vm320_vm3, %v489_v58 }
  0xf6   :  { %v447_v63 = vsel %vm295_vm4, %v367_v62, %v419_v7  ;;  %v448_v2 = vsel %vm295_vm4, %v419_v7, %v367_v62 }
  0xf7   :  { %v449_v3 = vrot.slane %v448_v2, 4  ;;  %496 = vst [vmem:[#allocation1 + $0x10] ss:$2 sm:$0xff] %v447_v63  ;;  %583 = vmatmul.f32.gmra.mxu2 %v1306_v13  ;;  %v503_v4 = vld.sshfl [vmem:[#allocation1 + $0x8] sm:$0xff pattern:$0x75316420] }
  0xf8   :  { %859 = vmatmul.msk.f32.vlgmr.msrb.gmra.mxu3 %vm320_vm3, %v503_v4  ;;  %v502_v13 = vld.sshfl [vmem:[#allocation1] sm:$0xff pattern:$0x75316420] }
  0xf9   :  { %497 = vst [vmem:[#allocation1 + $0x11] ss:$2 sm:$0xff] %v449_v3 }
  0xfa   :  { %v128_v6 = vpop.permute.xlu0 %127  ;;  %v201_v5 = vpop.permute.xlu1 %200 }
  0xfb   :  { %v334_v11 = vsel %vm320_vm3, %v1176_v46, %v128_v6 }
  0xfc   :  { %v351_v12 = vsel %vm337_vm5, %v334_v11, %v201_v5 }
  0xfd   :  { %v368_v17 = vsel %vm354_vm6, %v351_v12, %v274_v30  ;;  %857 = vmatmul.msk.f32.gmra.mxu1 %vm320_vm3, %v491_v55 }
  0xfe   :  { %v450_v18 = vsel %vm295_vm4, %v368_v17, %v420_v10 }
  0xff   :  { %498 = vst [vmem:[#allocation1 + $0x20] ss:$2 sm:$0xff] %v450_v18  ;;  %586 = vmatmul.f32.gmra.mxu2 %v502_v13 }
 0x100   :  { %v505_v19 = vld.sshfl [vmem:[#allocation1 + $0x18] sm:$0xff pattern:$0x75316420]  ;;  %v504_v61 = vld.sshfl [vmem:[#allocation1 + $0x10] sm:$0xff pattern:$0x75316420] }
 0x101   :  { %860 = vmatmul.msk.f32.gmra.mxu3 %vm320_vm3, %v505_v19 }
 0x105   :  { %858 = vmatmul.msk.f32.gmra.mxu1 %vm320_vm3, %v1308_v16 }
 0x106   :  { %v507_v46 = vld.sshfl [vmem:[#allocation1 + $0x28] sm:$0xff pattern:$0x75316420]  ;;  %v506_v21 = vld.sshfl [vmem:[#allocation1 + $0x20] sm:$0xff pattern:$0x75316420] }
 0x107   :  { %589 = vmatmul.f32.gmra.mxu2 %v504_v61 }
 0x109   :  { %861 = vmatmul.msk.f32.gmra.mxu3 %vm320_vm3, %v507_v46 }
 0x10f   :  { %592 = vmatmul.f32.gmra.mxu2 %v506_v21 }
 0x111   :  { %862 = vmatmul.msk.f32.gmra.mxu3 %vm320_vm3, %v509_v22 }
 0x115   :  { %v563_v23 = vpop.f32.mrf.mxu0  ;;  %v616_v34 = vpop.f32.mrf.mxu1 }
 0x116   :  { %v617_v25 = vadd.f32 %v616_v34, %v563_v23 }
 0x118   :  { %v664_v15 = vrot.slane %v617_v25, 4  ;;  %676 = vst [vmem:[#allocation1] ss:$2 sm:$0xff] %v617_v25 }
 0x11a   :  { %678 = vst [vmem:[#allocation1 + $0x1] ss:$2 sm:$0xff] %v664_v15 }
 0x121   :  { %v681_v59 = vld.sshfl [vmem:[#allocation1] sm:$0xff pattern:$0x75316420] }
 0x122   :  { %v566_v27 = vpop.f32.mrf.mxu0  ;;  %v619_v60 = vpop.f32.mrf.mxu1 }
 0x123   :  { %v620_v29 = vadd.f32 %v619_v60, %v566_v27 }
 0x125   :  { %v665_v16 = vrot.slane %v620_v29, 4  ;;  %680 = vst [vmem:[#allocation1 + $0x10] ss:$2 sm:$0xff] %v620_v29 }
 0x127   :  { %684 = vst [vmem:[#allocation1 + $0x20] ss:$2 sm:$0xff] %v665_v16 }
 0x12c   :  { %v682_v39 = vld.sshfl [vmem:[#allocation1 + $0x10] sm:$0xff pattern:$0x75316420] }
 0x12d   :  { %v737_v58 = vsel %vm295_vm4, %v682_v39, -inf }
 0x12e   :  { %v738_v4 = vmax.f32 %v681_v59, %v737_v58 }
 0x130   :  { %v739_v18 = vrot.slane %v738_v4, 4 }
 0x143   :  { %v569_v31 = vpop.f32.mrf.mxu0  ;;  %v622_v14 = vpop.f32.mrf.mxu1 }
 0x144   :  { %v623_v33 = vadd.f32 %v622_v14, %v569_v31 }
 0x146   :  { %v666_v36 = vrot.slane %v623_v33, 4  ;;  %686 = vst [vmem:[#allocation1 + $0x21] ss:$2 sm:$0xff] %v623_v33  ;;  %v740_v33 = vmax.f32 %v738_v4, %v739_v18 }
 0x148   :  { %688 = vst [vmem:[#allocation1 + $0x30] ss:$2 sm:$0xff] %v666_v36 }
 0x14a   :  { %v578_v32 = vpop.f32.mrf.mxu2 }
 0x14b   :  { %v572_v0 = vpop.f32.mrf.mxu0  ;;  %v625_v51 = vpop.f32.mrf.mxu1 }
 0x14c   :  { %v626_v9 = vadd.f32 %v625_v51, %v572_v0 }
 0x14d   :  { %v689_v47 = vld.sshfl [vmem:[#allocation1 + $0x20] sm:$0xff pattern:$0x75316420] }
 0x14e   :  { %v667_v37 = vrot.slane %v626_v9, 4  ;;  %691 = vst [vmem:[#allocation1] ss:$2 sm:$0xff] %v626_v9 }
 0x14f   :  { %v690_v56 = vld.sshfl [vmem:[#allocation1 + $0x30] sm:$0xff pattern:$0x75316420] }
 0x150   :  { %692 = vst [vmem:[#allocation1 + $0x1] ss:$2 sm:$0xff] %v667_v37  ;;  %v745_v2 = vsel %vm295_vm4, %v690_v56, -inf }
 0x151   :  { %v746_v5 = vmax.f32 %v689_v47, %v745_v2 }
 0x153   :  { %v747_v21 = vrot.slane %v746_v5, 4 }
 0x155   :  { %v748_v31 = vmax.f32 %v746_v5, %v747_v21 }
 0x157   :  { %v694_v43 = vld.sshfl [vmem:[#allocation1] sm:$0xff pattern:$0x75316420] }
 0x16a   :  { %v575_v38 = vpop.f32.mrf.mxu0  ;;  %v628_v42 = vpop.f32.mrf.mxu1 }
 0x16b   :  { %v629_v8 = vadd.f32 %v628_v42, %v575_v38  ;;  %v1367_v53 = vpop.f32.mrf.mxu3  ;;  %v749_v38 = vrot.slane %v748_v31, 2 }
 0x16d   :  { %v668_v44 = vrot.slane %v629_v8, 4  ;;  %693 = vst [vmem:[#allocation1 + $0x10] ss:$2 sm:$0xff] %v629_v8  ;;  %v741_v8 = vrot.slane %v740_v33, 2 }
 0x16f   :  { %696 = vst [vmem:[#allocation1 + $0x20] ss:$2 sm:$0xff] %v668_v44 }
 0x172   :  { %v581_v50 = vpop.f32.mrf.mxu2  ;;  %v631_v52 = vpop.f32.mrf.mxu1 }
 0x173   :  { %v632_v54 = vadd.f32 %v631_v52, %v578_v32  ;;  %v750_v52 = vmax.f32 %v748_v31, %v749_v38 }
 0x174   :  { %v695_v7 = vld.sshfl [vmem:[#allocation1 + $0x10] sm:$0xff pattern:$0x75316420] }
 0x175   :  { %v669_v40 = vrot.slane %v632_v54, 4  ;;  %697 = vst [vmem:[#allocation1 + $0x21] ss:$2 sm:$0xff] %v632_v54  ;;  %v753_v3 = vsel %vm295_vm4, %v695_v7, -inf  ;;  %v742_v54 = vmax.f32 %v740_v33, %v741_v8 }
 0x176   :  { %v754_v10 = vmax.f32 %v694_v43, %v753_v3  ;;  %v751_v43 = vrot.slane %v750_v52, 1 }
 0x177   :  { %698 = vst [vmem:[#allocation1 + $0x30] ss:$2 sm:$0xff] %v669_v40 }
 0x178   :  { %v755_v22 = vrot.slane %v754_v10, 4 }
 0x17a   :  { %v584_v45 = vpop.f32.mrf.mxu2  ;;  %v634_v57 = vpop.f32.mrf.mxu1  ;;  %v756_v36 = vmax.f32 %v754_v10, %v755_v22 }
 0x17b   :  { %v635_v24 = vadd.f32 %v634_v57, %v581_v50  ;;  %v640_v26 = vpop.f32.mrf.mxu3 }
 0x17c   :  { %v699_v28 = vld.sshfl [vmem:[#allocation1 + $0x20] sm:$0xff pattern:$0x75316420]  ;;  %v757_v39 = vrot.slane %v756_v36, 2 }
 0x17d   :  { %v670_v55 = vrot.slane %v635_v24, 4  ;;  %701 = vst [vmem:[#allocation1] ss:$2 sm:$0xff] %v635_v24 }
 0x17e   :  { %v700_v63 = vld.sshfl [vmem:[#allocation1 + $0x30] sm:$0xff pattern:$0x75316420]  ;;  %v758_v40 = vmax.f32 %v756_v36, %v757_v39 }
 0x17f   :  { %702 = vst [vmem:[#allocation1 + $0x1] ss:$2 sm:$0xff] %v670_v55  ;;  %v761_v30 = vsel %vm295_vm4, %v700_v63, -inf }
 0x180   :  { %v762_v13 = vmax.f32 %v699_v28, %v761_v30 }
 0x182   :  { %v587_v41 = vpop.f32.mrf.mxu2  ;;  %v637_v20 = vpop.f32.mrf.mxu1  ;;  %v763_v27 = vrot.slane %v762_v13, 4 }
 0x183   :  { %v641_v35 = vadd.f32 %v640_v26, %v587_v41  ;;  %v638_v1 = vadd.f32 %v637_v20, %v584_v45  ;;  %v743_v41 = vrot.slane %v742_v54, 1 }
 0x184   :  { %v643_v48 = vpop.f32.mrf.mxu3  ;;  %v764_v51 = vmax.f32 %v762_v13, %v763_v27 }
 0x185   :  { %v672_v49 = vrot.slane %v641_v35, 4  ;;  %707 = vst [vmem:[#allocation1 + $0x21] ss:$2 sm:$0xff] %v641_v35  ;;  %v671_v62 = vrot.slane %v638_v1, 4  ;;  %v759_v35 = vrot.slane %v758_v40, 1  ;;  %v744_v3 = vmax.f32 %v742_v54, %v743_v41 }
 0x186   :  { %703 = vst [vmem:[#allocation1 + $0x10] ss:$2 sm:$0xff] %v638_v1  ;;  %v704_v17 = vld.sshfl [vmem:[#allocation1] sm:$0xff pattern:$0x75316420]  ;;  %v765_v44 = vrot.slane %v764_v51, 2 }
 0x187   :  { %708 = vst [vmem:[#allocation1 + $0x30] ss:$2 sm:$0xff] %v672_v49  ;;  %v760_v4 = vmax.f32 %v758_v40, %v759_v35  ;;  %v801_v13 = vmax.f32 %v744_v3, 0.0 }
 0x188   :  { %706 = vst [vmem:[#allocation1 + $0x20] ss:$2 sm:$0xff] %v671_v62  ;;  %v766_v45 = vmax.f32 %v764_v51, %v765_v44  ;;  %v752_v62 = vmax.f32 %v750_v52, %v751_v43 }
 0x18a   :  { %v590_v6 = vpop.f32.mrf.mxu2  ;;  %v767_v1 = vrot.slane %v766_v45, 1  ;;  %v802_v18 = vmax.f32 %v752_v62, 0.0 }
 0x18b   :  { %v644_v11 = vadd.f32 %v643_v48, %v590_v6 }
 0x18c   :  { %v646_v12 = vpop.f32.mrf.mxu3  ;;  %v768_v30 = vmax.f32 %v766_v45, %v767_v1 }
 0x18d   :  { %v673_v19 = vrot.slane %v644_v11, 4  ;;  %v705_v61 = vld.sshfl [vmem:[#allocation1 + $0x10] sm:$0xff pattern:$0x75316420]  ;;  %711 = vst [vmem:[#allocation1] ss:$2 sm:$0xff] %v644_v11 }
 0x18e   :  { %v710_v46 = vld.sshfl [vmem:[#allocation1 + $0x30] sm:$0xff pattern:$0x75316420]  ;;  %v769_v23 = vsel %vm295_vm4, %v705_v61, -inf  ;;  %v804_v22 = vmax.f32 %v768_v30, 0.0 }
 0x18f   :  { %v709_v34 = vld.sshfl [vmem:[#allocation1 + $0x20] sm:$0xff pattern:$0x75316420]  ;;  %712 = vst [vmem:[#allocation1 + $0x1] ss:$2 sm:$0xff] %v673_v19  ;;  %v770_v25 = vmax.f32 %v704_v17, %v769_v23  ;;  %v777_v15 = vsel %vm295_vm4, %v710_v46, -inf }
 0x190   :  { %v778_v60 = vmax.f32 %v709_v34, %v777_v15  ;;  %v803_v19 = vmax.f32 %v760_v4, 0.0  ;;  %v818_v15 = vsel %vm817_vm7, %v802_v18, %v801_v13 }
 0x191   :  { %v771_v29 = vrot.slane %v770_v25, 4 }
 0x192   :  { %v593_v16 = vpop.f32.mrf.mxu2  ;;  %v779_v9 = vrot.slane %v778_v60, 4  ;;  %v820_v27 = vsel %vm819_vm8, %v803_v19, %v818_v15 }
 0x193   :  { %v647_v14 = vadd.f32 %v646_v12, %v593_v16  ;;  %v772_v32 = vmax.f32 %v770_v25, %v771_v29  ;;  %v822_v16 = vsel %vm821_vm9, %v804_v22, %v820_v27 }
 0x194   :  { %v649_v0 = vpop.f32.mrf.mxu3  ;;  %v780_v47 = vmax.f32 %v778_v60, %v779_v9 }
 0x195   :  { %v674_v59 = vrot.slane %v647_v14, 4  ;;  %v650_v37 = vadd.f32 %v649_v0, %v1367_v53  ;;  %713 = vst [vmem:[#allocation1 + $0x10] ss:$2 sm:$0xff] %v647_v14  ;;  %v773_v50 = vrot.slane %v772_v32, 2 }
 0x196   :  { %v781_v57 = vrot.slane %v780_v47, 2  ;;  %v714_v24 = vld.sshfl [vmem:[#allocation1] sm:$0xff pattern:$0x75316420] }
 0x197   :  { %v675_v42 = vrot.slane %v650_v37, 4  ;;  %716 = vst [vmem:[#allocation1 + $0x20] ss:$2 sm:$0xff] %v674_v59  ;;  %v774_v53 = vmax.f32 %v772_v32, %v773_v50 }
 0x198   :  { %717 = vst [vmem:[#allocation1 + $0x21] ss:$2 sm:$0xff] %v650_v37  ;;  %v782_v48 = vmax.f32 %v780_v47, %v781_v57 }
 0x199   :  { %718 = vst [vmem:[#allocation1 + $0x30] ss:$2 sm:$0xff] %v675_v42  ;;  %v775_v49 = vrot.slane %v774_v53, 1 }
 0x19a   :  { %v783_v6 = vrot.slane %v782_v48, 1 }
 0x19b   :  { %v776_v11 = vmax.f32 %v774_v53, %v775_v49 }
 0x19c   :  { %v715_v56 = vld.sshfl [vmem:[#allocation1 + $0x10] sm:$0xff pattern:$0x75316420]  ;;  %v784_v61 = vmax.f32 %v782_v48, %v783_v6 }
 0x19d   :  { %v785_v26 = vsel %vm295_vm4, %v715_v56, -inf  ;;  %v805_v23 = vmax.f32 %v776_v11, 0.0 }
 0x19e   :  { %v786_v55 = vmax.f32 %v714_v24, %v785_v26  ;;  %v806_v29 = vmax.f32 %v784_v61, 0.0 }
 0x19f   :  { %v719_v28 = vld.sshfl [vmem:[#allocation1 + $0x20] sm:$0xff pattern:$0x75316420]  ;;  %v824_v14 = vsel %vm823_vm10, %v805_v23, %v822_v16 }
 0x1a0   :  { %v720_v20 = vld.sshfl [vmem:[#allocation1 + $0x30] sm:$0xff pattern:$0x75316420]  ;;  %v787_v7 = vrot.slane %v786_v55, 4  ;;  %v826_v0 = vsel %vm825_vm11, %v806_v29, %v824_v14 }
 0x1a1   :  { %v793_v58 = vsel %vm295_vm4, %v720_v20, -inf }
 0x1a2   :  { %v788_v63 = vmax.f32 %v786_v55, %v787_v7  ;;  %v794_v2 = vmax.f32 %v719_v28, %v793_v58 }
 0x1a4   :  { %v789_v5 = vrot.slane %v788_v63, 2  ;;  %v795_v10 = vrot.slane %v794_v2, 4 }
 0x1a6   :  { %v790_v12 = vmax.f32 %v788_v63, %v789_v5  ;;  %v796_v17 = vmax.f32 %v794_v2, %v795_v10 }
 0x1a8   :  { %v791_v46 = vrot.slane %v790_v12, 1  ;;  %v797_v21 = vrot.slane %v796_v17, 2 }
 0x1aa   :  { %v792_v34 = vmax.f32 %v790_v12, %v791_v46  ;;  %v798_v25 = vmax.f32 %v796_v17, %v797_v21 }
 0x1ac   :  { %v799_v60 = vrot.slane %v798_v25, 1  ;;  %v807_v31 = vmax.f32 %v792_v34, 0.0 }
 0x1ae   :  { %v800_v33 = vmax.f32 %v798_v25, %v799_v60  ;;  %v828_v51 = vsel %vm827_vm12, %v807_v31, %v826_v0 }
 0x1b0   :  { %v808_v36 = vmax.f32 %v800_v33, 0.0 }
 0x1b2   :  { %v830_v9 = vsel %vm829_vm13, %v808_v36, %v828_v51 }
 0x1b3   :  { %832 = vst [vmem:[#allocation7] sm:$0xff] %v830_v9 }
 0x1b4   :  { %843 = dma.vmem_to_hbm [thread:$0]  %s839_s23, 128, %s841_s26, [#allocation4]  }
 0x1b5   :  { %983 = dma.done.wait [#allocation4], 128  }
 0x1b6   :  { %984 = vsyncadd [#allocation4], 4294967168 }
 0x1b7   :  { %848 = vsyncpa [#allocation3], 1 }
 0x1b8   :  { %849 = vsyncpa [#allocation6], 1 }
 0x1b9   :  { %850 = vsyncpa [#allocation4], 1 }

</bundles_post_ra>
